<compile_context>
chip_gen: v7x
topology: tpu7x:2x2x1
jax: 0.10.0
libtpu: 0.0.40
codegen_flags: <defaults>
</compile_context>

<pallas_src>
import functools

import jax
import jax.numpy as jnp
from jax import lax
from jax.experimental import pallas as pl
from jax.experimental.pallas import tpu as pltpu

NORM_EPS = 1e-8  # ObsNormalizer epsilon used in normalize()


def _stats_kernel(obs_ref, mean_ref, var_ref, count_ref,
                  new_mean_ref, new_var_ref, scale_ref,
                  sum_ref, sumsq_ref, *, total_rows, tile_rows, needs_mask):
    """Pass 1: accumulate per-feature sum / sumsq over batch tiles, then merge stats."""
    b = pl.program_id(1)
    nb = pl.num_programs(1)

    @pl.when(b == 0)
    def _init():
        sum_ref[...] = jnp.zeros_like(sum_ref)
        sumsq_ref[...] = jnp.zeros_like(sumsq_ref)

    x = obs_ref[...].astype(jnp.float32)                       # (TB, TD)
    if needs_mask:
        rows = lax.broadcasted_iota(jnp.int32, x.shape, 0) + b * tile_rows
        x = jnp.where(rows < total_rows, x, 0.0)               # zero out padded rows

    sum_ref[...] += jnp.sum(x, axis=0, keepdims=True)          # (1, TD)
    sumsq_ref[...] += jnp.sum(x * x, axis=0, keepdims=True)    # (1, TD)

    @pl.when(b == nb - 1)
    def _finalize():
        bc = jnp.float32(total_rows)
        batch_mean = sum_ref[...] / bc
        # sum of squared deviations about the batch mean
        m2_batch = sumsq_ref[...] - bc * batch_mean * batch_mean
        # torch.var default is unbiased (N-1); NaN for a single-row batch, same as torch.
        batch_var = m2_batch / (bc - 1.0)

        mean = mean_ref[...]                                   # (1, TD)
        var = var_ref[...]                                     # (1, TD)
        count = count_ref[0]                                   # scalar, SMEM
        tot = count + bc                                       # scalar

        delta = batch_mean - mean
        new_mean = mean + delta * (bc / tot)
        m2 = var * count + batch_var * bc + (delta * delta) * (count * bc / tot)
        new_var = m2 / tot

        new_mean_ref[...] = new_mean
        new_var_ref[...] = new_var
        scale_ref[...] = lax.rsqrt(new_var + NORM_EPS)         # O(D) transcendental


def _normalize_kernel(obs_ref, mean_ref, scale_ref, out_ref):
    """Pass 2: out = (x - new_mean) * rsqrt(new_var + eps)."""
    x = obs_ref[...].astype(jnp.float32)
    out_ref[...] = ((x - mean_ref[...]) * scale_ref[...]).astype(out_ref.dtype)


def _pick_tile(full, cap, align):
    if full <= cap:
        return full                     # full-extent block is always legal
    return max(align, (cap // align) * align)


def obs_normalizer_forward(obs, mean, var, count, *,
                           block_rows=512, block_cols=1024):
    """Functional ObsNormalizer.forward.

    Args:
      obs:   (B, D) float array (f32 or bf16)
      mean:  (D,)   float32 running mean buffer
      var:   (D,)   float32 running var buffer
      count: (1,)   float32 running count buffer
    Returns:
      (normalized_obs_f32, new_mean, new_var, new_count) with buffer shapes preserved.
    """
    B, D = obs.shape
    mean2 = mean.reshape(1, D).astype(jnp.float32)
    var2 = var.reshape(1, D).astype(jnp.float32)
    count1 = count.reshape(1).astype(jnp.float32)

    tb = _pick_tile(B, block_rows, 8)
    td = _pick_tile(D, block_cols, 128)
    nb = pl.cdiv(B, tb)
    nd = pl.cdiv(D, td)
    needs_mask = (B % tb) != 0

    # VMEM budget: double-buffered (tb, td) input + f32 output tiles + small row vectors.
    # Kept below v7x's 64 MiB physical VMEM; raises v5e's 16 MiB scoped default.
    itemsize = jnp.dtype(obs.dtype).itemsize
    est = 2 * tb * td * (itemsize + 4) + 16 * td * 4 + (2 << 20)
    vmem_limit = int(min(60 << 20, max(32 << 20, est)))

    smem_spec = pl.BlockSpec(memory_space=pltpu.MemorySpace.SMEM)
    row_spec = pl.BlockSpec((1, td), lambda d, b: (0, d))
    obs_spec = pl.BlockSpec((tb, td), lambda d, b: (b, d))

    stats_kernel = functools.partial(
        _stats_kernel, total_rows=B, tile_rows=tb, needs_mask=needs_mask)

    new_mean, new_var, scale = pl.pallas_call(
        stats_kernel,
        out_shape=(
            jax.ShapeDtypeStruct((1, D), jnp.float32),
            jax.ShapeDtypeStruct((1, D), jnp.float32),
            jax.ShapeDtypeStruct((1, D), jnp.float32),
        ),
        grid=(nd, nb),
        in_specs=[obs_spec, row_spec, row_spec, smem_spec],
        out_specs=(row_spec, row_spec, row_spec),
        scratch_shapes=[pltpu.VMEM((1, td), jnp.float32),
                        pltpu.VMEM((1, td), jnp.float32)],
        compiler_params=pltpu.CompilerParams(
            dimension_semantics=("parallel", "arbitrary"),
            vmem_limit_bytes=vmem_limit),
    )(obs, mean2, var2, count1)

    out = pl.pallas_call(
        _normalize_kernel,
        out_shape=jax.ShapeDtypeStruct((B, D), jnp.float32),
        grid=(nd, nb),
        in_specs=[obs_spec, row_spec, row_spec],
        out_specs=pl.BlockSpec((tb, td), lambda d, b: (b, d)),
        compiler_params=pltpu.CompilerParams(
            dimension_semantics=("parallel", "parallel"),
            vmem_limit_bytes=vmem_limit),
    )(obs, new_mean, scale)

    new_count = (count1 + jnp.float32(B)).reshape(count.shape)
    return out, new_mean.reshape(D), new_var.reshape(D), new_count


def _reference(obs, mean0, var0, count0):
    B = obs.shape[0]
    bm = jnp.mean(obs, axis=0)
    bv = jnp.var(obs, axis=0, ddof=1)
    bc = jnp.float32(B)
    delta = bm - mean0
    tot = count0 + bc
    nm = mean0 + delta * bc / tot
    m2 = var0 * count0 + bv * bc + delta * delta * count0 * bc / tot
    nv = m2 / tot
    out = (obs - nm) / jnp.sqrt(nv + NORM_EPS)
    return out, nm, nv, tot


def _run_case(key, B, D, block_rows, block_cols):
    obs = jax.random.normal(key, (B, D), dtype=jnp.float32) * 2.0 + 0.5
    mean0 = jnp.ones((D,), dtype=jnp.float32)   # RunningMeanStd init: ones
    var0 = jnp.ones((D,), dtype=jnp.float32)
    count0 = jnp.ones((1,), dtype=jnp.float32)

    out, nm, nv, nc = obs_normalizer_forward(
        obs, mean0, var0, count0, block_rows=block_rows, block_cols=block_cols)
    jax.block_until_ready((out, nm, nv, nc))

    ref_out, ref_nm, ref_nv, ref_nc = _reference(obs, mean0, var0, count0)
    assert jnp.allclose(out, ref_out, atol=1e-4, rtol=1e-4), "normalized obs mismatch"
    assert jnp.allclose(nm, ref_nm, atol=1e-4, rtol=1e-4), "new mean mismatch"
    assert jnp.allclose(nv, ref_nv, atol=1e-4, rtol=1e-4), "new var mismatch"
    assert jnp.allclose(nc, ref_nc, atol=1e-5, rtol=1e-5), "new count mismatch"


if __name__ == "__main__":
    key = jax.random.PRNGKey(0)
    k1, k2 = jax.random.split(key)

    # Case 1: multi-tile batch reduction with a non-divisible last tile (masking path),
    # lane-dense feature dim (D = 128).
    _run_case(k1, B=200, D=128, block_rows=128, block_cols=128)

    # Case 2: tiny single-block case matching the original module usage (obs dim 32).
    _run_case(k2, B=8, D=32, block_rows=512, block_cols=1024)

    print("KERNEL_OK")
</pallas_src>

<mosaic_0001>
module attributes {stable_mosaic.version = 11 : i64} {
  func.func @_stats_kernel(%arg0: i32, %arg1: i32, %arg2: memref<128x128xf32, #tpu.memory_space<vmem>>, %arg3: memref<1x128xf32, #tpu.memory_space<vmem>>, %arg4: memref<1x128xf32, #tpu.memory_space<vmem>>, %arg5: memref<1xf32, #tpu.memory_space<smem>>, %arg6: memref<1x128xf32, #tpu.memory_space<vmem>>, %arg7: memref<1x128xf32, #tpu.memory_space<vmem>>, %arg8: memref<1x128xf32, #tpu.memory_space<vmem>>, %arg9: memref<1x128xf32, #tpu.memory_space<vmem>>, %arg10: memref<1x128xf32, #tpu.memory_space<vmem>>) attributes {dimension_semantics = [#tpu.dimension_semantics<parallel>, #tpu.dimension_semantics<arbitrary>], iteration_bounds = array<i64: 1, 2>, scalar_prefetch = 0 : i64, scratch_operands = 2 : i64, tpu.core_type = #tpu.core_type<tc>, window_params = [{transform_indices = @transform_0, window_bounds = array<i64: 128, 128>}, {transform_indices = @transform_1, window_bounds = array<i64: 1, 128>}, {transform_indices = @transform_2, window_bounds = array<i64: 1, 128>}, {transform_indices = @transform_3, window_bounds = array<i64: 1>}, {transform_indices = @transform_4, window_bounds = array<i64: 1, 128>}, {transform_indices = @transform_5, window_bounds = array<i64: 1, 128>}, {transform_indices = @transform_6, window_bounds = array<i64: 1, 128>}]} {
    %c0_i32 = arith.constant 0 : i32
    %0 = arith.cmpi eq, %arg1, %c0_i32 : i32
    %1 = arith.extui %0 : i1 to i32
    %c0_i32_0 = arith.constant 0 : i32
    %2 = arith.cmpi ne, %1, %c0_i32_0 : i32
    scf.if %2 {
      %cst_13 = arith.constant 0.000000e+00 : f32
      %26 = vector.broadcast %cst_13 : f32 to vector<1x128xf32>
      %c0_14 = arith.constant 0 : index
      %c0_15 = arith.constant 0 : index
      %27 = vector.load %arg9[%c0_14, %c0_15] : memref<1x128xf32, #tpu.memory_space<vmem>>, vector<1x128xf32>
      tpu.vector_store %arg9[%c0_14, %c0_15], %26 {strides = array<i32>} : memref<1x128xf32, #tpu.memory_space<vmem>>, vector<1x128xf32>,
      %cst_16 = arith.constant 0.000000e+00 : f32
      %28 = vector.broadcast %cst_16 : f32 to vector<1x128xf32>
      %c0_17 = arith.constant 0 : index
      %c0_18 = arith.constant 0 : index
      %29 = vector.load %arg10[%c0_17, %c0_18] : memref<1x128xf32, #tpu.memory_space<vmem>>, vector<1x128xf32>
      tpu.vector_store %arg10[%c0_17, %c0_18], %28 {strides = array<i32>} : memref<1x128xf32, #tpu.memory_space<vmem>>, vector<1x128xf32>,
    } else {
    }
    %c0 = arith.constant 0 : index
    %c0_1 = arith.constant 0 : index
    %3 = vector.load %arg2[%c0, %c0_1] : memref<128x128xf32, #tpu.memory_space<vmem>>, vector<128x128xf32>
    %4 = tpu.iota {dimensions = array<i32: 0>} : vector<128x128xi32>
    %c128_i32 = arith.constant 128 : i32
    %5 = arith.muli %arg1, %c128_i32 : i32
    %6 = vector.broadcast %5 : i32 to vector<128x128xi32>
    %7 = arith.addi %4, %6 : vector<128x128xi32>
    %c200_i32 = arith.constant 200 : i32
    %8 = vector.broadcast %c200_i32 : i32 to vector<128x128xi32>
    %9 = arith.cmpi slt, %7, %8 : vector<128x128xi32>
    %cst = arith.constant 0.000000e+00 : f32
    %10 = vector.broadcast %cst : f32 to vector<128x128xf32>
    %11 = arith.select %9, %3, %10 : vector<128x128xi1>, vector<128x128xf32>
    %c0_2 = arith.constant 0 : index
    %c0_3 = arith.constant 0 : index
    %12 = vector.load %arg9[%c0_2, %c0_3] : memref<1x128xf32, #tpu.memory_space<vmem>>, vector<1x128xf32>
    %cst_4 = arith.constant dense<0.000000e+00> : vector<128xf32>
    %13 = vector.multi_reduction <add>, %11, %cst_4 [0] : vector<128x128xf32> to vector<128xf32>
    %14 = vector.shape_cast %13 : vector<128xf32> to vector<1x128xf32>
    %15 = arith.addf %12, %14 : vector<1x128xf32>
    %c0_5 = arith.constant 0 : index
    %c0_6 = arith.constant 0 : index
    %16 = vector.load %arg9[%c0_5, %c0_6] : memref<1x128xf32, #tpu.memory_space<vmem>>, vector<1x128xf32>
    tpu.vector_store %arg9[%c0_5, %c0_6], %15 {strides = array<i32>} : memref<1x128xf32, #tpu.memory_space<vmem>>, vector<1x128xf32>,
    %c0_7 = arith.constant 0 : index
    %c0_8 = arith.constant 0 : index
    %17 = vector.load %arg10[%c0_7, %c0_8] : memref<1x128xf32, #tpu.memory_space<vmem>>, vector<1x128xf32>
    %18 = arith.mulf %11, %11 : vector<128x128xf32>
    %cst_9 = arith.constant dense<0.000000e+00> : vector<128xf32>
    %19 = vector.multi_reduction <add>, %18, %cst_9 [0] : vector<128x128xf32> to vector<128xf32>
    %20 = vector.shape_cast %19 : vector<128xf32> to vector<1x128xf32>
    %21 = arith.addf %17, %20 : vector<1x128xf32>
    %c0_10 = arith.constant 0 : index
    %c0_11 = arith.constant 0 : index
    %22 = vector.load %arg10[%c0_10, %c0_11] : memref<1x128xf32, #tpu.memory_space<vmem>>, vector<1x128xf32>
    tpu.vector_store %arg10[%c0_10, %c0_11], %21 {strides = array<i32>} : memref<1x128xf32, #tpu.memory_space<vmem>>, vector<1x128xf32>,
    %c1_i32 = arith.constant 1 : i32
    %23 = arith.cmpi eq, %arg1, %c1_i32 : i32
    %24 = arith.extui %23 : i1 to i32
    %c0_i32_12 = arith.constant 0 : i32
    %25 = arith.cmpi ne, %24, %c0_i32_12 : i32
    scf.if %25 {
      %c0_13 = arith.constant 0 : index
      %c0_14 = arith.constant 0 : index
      %26 = vector.load %arg9[%c0_13, %c0_14] : memref<1x128xf32, #tpu.memory_space<vmem>>, vector<1x128xf32>
      %cst_15 = arith.constant 2.000000e+02 : f32
      %27 = vector.broadcast %cst_15 : f32 to vector<1x128xf32>
      %28 = arith.divf %26, %27 : vector<1x128xf32>
      %c0_16 = arith.constant 0 : index
      %c0_17 = arith.constant 0 : index
      %29 = vector.load %arg10[%c0_16, %c0_17] : memref<1x128xf32, #tpu.memory_space<vmem>>, vector<1x128xf32>
      %cst_18 = arith.constant 2.000000e+02 : f32
      %30 = vector.broadcast %cst_18 : f32 to vector<1x128xf32>
      %31 = arith.mulf %30, %28 : vector<1x128xf32>
      %32 = arith.mulf %31, %28 : vector<1x128xf32>
      %33 = arith.subf %29, %32 : vector<1x128xf32>
      %cst_19 = arith.constant 2.000000e+02 : f32
      %cst_20 = arith.constant 1.000000e+00 : f32
      %34 = arith.subf %cst_19, %cst_20 : f32
      %35 = vector.broadcast %34 : f32 to vector<1x128xf32>
      %36 = arith.divf %33, %35 : vector<1x128xf32>
      %c0_21 = arith.constant 0 : index
      %c0_22 = arith.constant 0 : index
      %37 = vector.load %arg3[%c0_21, %c0_22] : memref<1x128xf32, #tpu.memory_space<vmem>>, vector<1x128xf32>
      %c0_23 = arith.constant 0 : index
      %c0_24 = arith.constant 0 : index
      %38 = vector.load %arg4[%c0_23, %c0_24] : memref<1x128xf32, #tpu.memory_space<vmem>>, vector<1x128xf32>
      %c0_25 = arith.constant 0 : index
      %39 = memref.load %arg5[%c0_25] : memref<1xf32, #tpu.memory_space<smem>>
      %cst_26 = arith.constant 2.000000e+02 : f32
      %40 = arith.addf %39, %cst_26 : f32
      %41 = arith.subf %28, %37 : vector<1x128xf32>
      %cst_27 = arith.constant 2.000000e+02 : f32
      %42 = arith.divf %cst_27, %40 : f32
      %43 = vector.broadcast %42 : f32 to vector<1x128xf32>
      %44 = arith.mulf %41, %43 : vector<1x128xf32>
      %45 = arith.addf %37, %44 : vector<1x128xf32>
      %46 = vector.broadcast %39 : f32 to vector<1x128xf32>
      %47 = arith.mulf %38, %46 : vector<1x128xf32>
      %cst_28 = arith.constant 2.000000e+02 : f32
      %48 = vector.broadcast %cst_28 : f32 to vector<1x128xf32>
      %49 = arith.mulf %36, %48 : vector<1x128xf32>
      %50 = arith.addf %47, %49 : vector<1x128xf32>
      %51 = arith.mulf %41, %41 : vector<1x128xf32>
      %cst_29 = arith.constant 2.000000e+02 : f32
      %52 = arith.mulf %39, %cst_29 : f32
      %53 = arith.divf %52, %40 : f32
      %54 = vector.broadcast %53 : f32 to vector<1x128xf32>
      %55 = arith.mulf %51, %54 : vector<1x128xf32>
      %56 = arith.addf %50, %55 : vector<1x128xf32>
      %57 = vector.broadcast %40 : f32 to vector<1x128xf32>
      %58 = arith.divf %56, %57 : vector<1x128xf32>
      %c0_30 = arith.constant 0 : index
      %c0_31 = arith.constant 0 : index
      %59 = vector.load %arg6[%c0_30, %c0_31] : memref<1x128xf32, #tpu.memory_space<vmem>>, vector<1x128xf32>
      tpu.vector_store %arg6[%c0_30, %c0_31], %45 {strides = array<i32>} : memref<1x128xf32, #tpu.memory_space<vmem>>, vector<1x128xf32>,
      %c0_32 = arith.constant 0 : index
      %c0_33 = arith.constant 0 : index
      %60 = vector.load %arg7[%c0_32, %c0_33] : memref<1x128xf32, #tpu.memory_space<vmem>>, vector<1x128xf32>
      tpu.vector_store %arg7[%c0_32, %c0_33], %58 {strides = array<i32>} : memref<1x128xf32, #tpu.memory_space<vmem>>, vector<1x128xf32>,
      %cst_34 = arith.constant 9.99999993E-9 : f32
      %61 = vector.broadcast %cst_34 : f32 to vector<1x128xf32>
      %62 = arith.addf %58, %61 : vector<1x128xf32>
      %63 = math.rsqrt %62 : vector<1x128xf32>
      %c0_35 = arith.constant 0 : index
      %c0_36 = arith.constant 0 : index
      %64 = vector.load %arg8[%c0_35, %c0_36] : memref<1x128xf32, #tpu.memory_space<vmem>>, vector<1x128xf32>
      tpu.vector_store %arg8[%c0_35, %c0_36], %63 {strides = array<i32>} : memref<1x128xf32, #tpu.memory_space<vmem>>, vector<1x128xf32>,
    } else {
    }
    return
  }
  func.func @transform_0(%arg0: i32, %arg1: i32) -> (i32, i32) {
    %c0_i32 = arith.constant 0 : i32
    return %arg1, %arg0 : i32, i32
  }
  func.func @transform_1(%arg0: i32, %arg1: i32) -> (i32, i32) {
    %c0_i32 = arith.constant 0 : i32
    %c0_i32_0 = arith.constant 0 : i32
    return %c0_i32, %arg0 : i32, i32
  }
  func.func @transform_2(%arg0: i32, %arg1: i32) -> (i32, i32) {
    %c0_i32 = arith.constant 0 : i32
    %c0_i32_0 = arith.constant 0 : i32
    return %c0_i32, %arg0 : i32, i32
  }
  func.func @transform_3(%arg0: i32, %arg1: i32) -> i32 {
    %c0_i32 = arith.constant 0 : i32
    %c0_i32_0 = arith.constant 0 : i32
    return %c0_i32 : i32
  }
  func.func @transform_4(%arg0: i32, %arg1: i32) -> (i32, i32) {
    %c0_i32 = arith.constant 0 : i32
    %c0_i32_0 = arith.constant 0 : i32
    return %c0_i32, %arg0 : i32, i32
  }
  func.func @transform_5(%arg0: i32, %arg1: i32) -> (i32, i32) {
    %c0_i32 = arith.constant 0 : i32
    %c0_i32_0 = arith.constant 0 : i32
    return %c0_i32, %arg0 : i32, i32
  }
  func.func @transform_6(%arg0: i32, %arg1: i32) -> (i32, i32) {
    %c0_i32 = arith.constant 0 : i32
    %c0_i32_0 = arith.constant 0 : i32
    return %c0_i32, %arg0 : i32, i32
  }
}

</mosaic_0001>

<bundles_post_ra>
// kernel: tpu_custom_call.1
= control target key start
LH: loop header
LB: loop body
LE: loop exit
PB: predicated region body
PF: predicated region fallthrough
CT: control target
= control target key end

     0   :  { %s1233_s0 = inlined_call_operand.hbm [shape: f32[200,128], index: 0, kind: input, shape index: {}]   ;;  %s1234_s1 = inlined_call_operand.vmem [shape: f32[1,128], index: 1, kind: input, shape index: {}]   ;;  %s1235_s2 = inlined_call_operand.vmem [shape: f32[1,128], index: 2, kind: input, shape index: {}]   ;;  %s1236_s3 = inlined_call_operand.<no memory space> [shape: f32[1], index: 3, kind: input, shape index: {}]   ;;  %s1237_s4 = inlined_call_operand.hbm [shape: f32[1,128], index: 4, kind: output, shape index: {0}]   ;;  %s1238_s5 = inlined_call_operand.hbm [shape: f32[1,128], index: 5, kind: output, shape index: {1}]   ;;  %s1239_s6 = inlined_call_operand.hbm [shape: f32[1,128], index: 6, kind: output, shape index: {2}]  }
   0x1   :  { %12 = sst [smem:[#allocation4]] %s1236_s3 }
   0x2   :  { %13 = vsyncpa [#allocation6], 0 }
   0x3   :  { %15 = vsyncpa [#allocation6 + $0x1], 0 }
   0x4   :  { %16 = vsyncpa [#allocation7], 0 }
   0x5   :  { %17 = vsyncpa [#allocation10], 0  ;;  %s986_s23 = smov 0   ;;  %s988_s24 = smov 0  }
   0x6   :  { %s990_s25 = smov 0   ;;  %s992_s26 = smov 0  }
   0x7   :  { %s994_s27 = smov 0   ;;  %s996_s28 = smov 0  }
   0x8 LB: > { %s670_s3 = sadd.s32 4294967295, %s939_s28   ;;  %s32_s29 = sadd.s32 1, %s935_s27  ;;  %s939_s28 = sphi %s996_s28, %s23_s28   ;;  %s935_s27 = sphi %s994_s27, %s1246_s27   ;;  %s931_s26 = sphi %s992_s26, %s1245_s26   ;;  %s927_s25 = sphi %s990_s25, %s1244_s25   ;;  %s923_s24 = sphi %s988_s24, %s1243_s24   ;;  %s919_s23 = sphi %s986_s23, %s1242_s23  }
   0x9   : > { %p33_p0 = scmp.ge.s32.totalorder %s32_s29, 2  ;;  %s44_s30 = sadd.s32 1, %s927_s25 }
   0xa   : > { %p51_p1 = scmp.ne.s32.totalorder %s927_s25, %s923_s24  ;;  %p52_p2 = scmp.eq.s32.totalorder %s939_s28, 0 }
   0xb   : > { %s1248_s29 = smov (%p33_p0, %s32_s29), 0  ;;  %p57_p4 = scmp.ne.s32.totalorder %s923_s24, %s919_s23 }
   0xc   : > { %p53_p3 = por %p52_p2, %p51_p1  ;;  %s39_s7 = ssub.s32 %s935_s27, %s1248_s29 }
   0xd   : > { %p58_p5 = scmp.eq.s32.totalorder %s670_s3, 0  ;;  %p42_p6 = scmp.eq.s32.totalorder %s39_s7, 0 }
   0xe   : > { %p674_p8 = scmp.ge.s32.totalorder %s939_s28, 2 }
   0xf   : > { %p1027_p7 = por %p58_p5, %p57_p4 }
  0x10   : > { %s1032_s9 = scalar_select %p42_p6, %s927_s25, %s44_s30  }
  0x11   : > { %243 = sbr.rel (%p674_p8) target bundleno = 59 (0x3b), region = 28 }
  0x18   : > { %246 = sbr.rel (!%p53_p3) target bundleno = 59 (0x3b), region = 32  ;;  %s247_s10 = sand.u32 (%p53_p3), 1, %s927_s25  }
  0x19   : > { %s676_s11 = sshll.u32 (%p53_p3), %s935_s27, 4  ;;  %s675_s12 = sshll.u32 (%p53_p3), %s247_s10, 7 }
  0x1a   : > { %s253_s13 = ssub.s32 (%p53_p3), 25, %s676_s11  ;;  %s1040_s16 = scalar_lea.sflag (%p53_p3), [#allocation6], %s247_s10 }
  0x1b   : > { %p254_p9 = scmp.lt.s32.totalorder (%p53_p3), %s253_s13, 16  ;;  %s251_s17 = scalar_lea.vmem (%p53_p3), [#allocation5], %s675_s12 }
  0x1f   : > { %s1250_s13 = smov (!%p254_p9, %s253_s13), 16 }
  0x20   : > { %s1037_s14 = sshll.u32 %s1250_s13, 7 }
  0x21   : > { %s258_s15 = ssub.s32 2048, %s1037_s14 }
  0x22   : > { %259 = vsyncadd %s1040_s16, %s258_s15  ;;  %p678_p10 = scmp.ne.s32.totalorder %s1037_s14, 0  ;;  %s695_s18 = sshll.u32 %s935_s27, 11 }
  0x23   : > { %s1048_s21 = scalar_lea.hbm %s1233_s0, %s695_s18  ;;  %s265_s22 = sshll.u32 %s251_s17, 4  ;;  %s1050_s22 = int_to_ptr.vmem [resolvable:$true] %s265_s22 }
  0x24   : > { %s775_s23 = scalar_lea.hbm %s1048_s21, %s1037_s14  ;;  %s779_s10 = scalar_lea.hbm %s1233_s0, 3200 }
  0x25   : > { %p776_p11 = scmp.ne.s32.totalorder %s1048_s21, %s775_s23  ;;  %p780_p0 = scmp.lt.u32.totalorder %s1048_s21, %s1233_s0 }
  0x26   : > { %p781_p1 = scmp.lt.u32.totalorder %s779_s10, %s775_s23  ;;  %p783_p3 = scmp.lt.u32.totalorder %s775_s23, %s1048_s21 }
  0x27   : > { %p777_p12 = pnand %p776_p11, %p678_p10 }
  0x28   : > { %p782_p2 = por %p781_p1, %p780_p0 }
  0x29   : > { %p778_p13 = pneg %p777_p12 }
  0x2a   : > { %p784_p4 = por %p783_p3, %p782_p2 }
  0x2c   : > { %p785_p5 = pnand %p784_p4, %p778_p13 }
  0x2e   : > { %788 = shalt.err (!%p785_p5)
}
  0x2f   : > { %s789_s13 = scalar_lea.vmem %s1050_s22, %s1037_s14  ;;  %s941_s15 = smov [#allocation5]  }
  0x30   : > { %p790_p6 = scmp.ne.s32.totalorder %s1050_s22, %s789_s13  ;;  %s793_s17 = sshll.u32 %s941_s15, 4  ;;  %s794_s17 = int_to_ptr.vmem [resolvable:$false] %s793_s17 }
  0x31   : > { %s795_s18 = scalar_lea.vmem %s794_s17, 4096  ;;  %p796_p11 = scmp.lt.s32.totalorder %s1050_s22, %s794_s17 }
  0x32   : > { %p791_p8 = pnand %p790_p6, %p678_p10  ;;  %p797_p12 = scmp.lt.s32.totalorder %s795_s18, %s789_s13 }
  0x34   : > { %p792_p9 = pneg %p791_p8  ;;  %p798_p0 = por %p797_p12, %p796_p11 }
  0x36   : > { %p799_p1 = pnand %p798_p0, %p792_p9 }
  0x38   : > { %802 = shalt.err (!%p799_p1)
}
  0x39   : > { %s942_s19 = smov 128   ;;  %s943_s20 = smov 8  }
  0x3a   : > { %271 = dma.hbm_to_vmem [thread:$0]  (%p678_p10), %s1048_s21, %s1037_s14, %s1050_s22, %s1040_s16, %s942_s19, %s942_s19, %s943_s20  }
  0x3b PF: > { %p682_p13 = scmp.ge.s32.totalorder %s939_s28, 1  ;;  %p273_p2 = scmp.lt.s32.totalorder %s939_s28, 3 }
  0x3d   : > { %p274_p3 = pnand %p682_p13, %p273_p2 }
  0x3e   : > { %s279_s23 = sand.u32 (!%p274_p3), 1, %s923_s24  }
  0x3f   : > { %277 = sbr.rel (%p274_p3) target bundleno = 264 (0x108), region = 36  ;;  %s683_s30 = sshll.u32 (!%p274_p3), %s279_s23, 7 }
  0x40   : > { %s280_s7 = scalar_lea.sflag (!%p274_p3), [#allocation6], %s279_s23  ;;  %s1080_s10 = scalar_lea.vmem (!%p274_p3), [#allocation5], %s683_s30 }
  0x46   : > { %906 = dma.done.wait (%p1027_p7), %s280_s7, 2048  }
  0x47   : > { %908 = vsyncadd (%p1027_p7), %s280_s7, 4294965248  ;;  %p684_p10 = scmp.ne.s32.totalorder %s931_s26, 0 }
  0x48   : > { %v944_v0 = vmov (!%p684_p10), 0.0  }
  0x49   : > { %327 = sbr.rel (%p684_p10) target bundleno = 80 (0x50), region = 44  ;;  %328 = vst [vmem:[#allocation2] sm:$0x1] (!%p684_p10), %v944_v0  ;;  %329 = vst [vmem:[#allocation3] sm:$0x1] (!%p684_p10), %v944_v0 }
  0x50 PF: > { %v346_v1 = vlaneseq  ;;  %s685_s14 = sshll.u32 %s931_s26, 7  ;;  %v330_v11 = vld [vmem:[%s1080_s10] sm:$0xff]  ;;  %v331_v12 = vld [vmem:[%s1080_s10 + $0x8] sm:$0xff]  ;;  %v332_v15 = vld [vmem:[%s1080_s10 + $0x10] sm:$0xff]  ;;  %p686_p7 = scmp.ne.s32.totalorder %s931_s26, 1 }
  0x51   : > { %v1091_v4 = vstv %s685_s14  ;;  %v333_v20 = vld [vmem:[%s1080_s10 + $0x18] sm:$0xff]  ;;  %v334_v26 = vld [vmem:[%s1080_s10 + $0x20] sm:$0xff]  ;;  %v335_v32 = vld [vmem:[%s1080_s10 + $0x28] sm:$0xff]  ;;  %s492_s8 = sld [smem:[#allocation4]] (!%p686_p7) }
  0x52   : > { %v1087_v2 = vshrl.u32 %v346_v1, 7  ;;  %v336_v39 = vld [vmem:[%s1080_s10 + $0x30] sm:$0xff]  ;;  %v337_v46 = vld [vmem:[%s1080_s10 + $0x38] sm:$0xff]  ;;  %v338_v53 = vld [vmem:[%s1080_s10 + $0x40] sm:$0xff] }
  0x53   : > { %v339_v60 = vld [vmem:[%s1080_s10 + $0x48] sm:$0xff] }
  0x54   : > { %v348_v3 = vadd.s32 8, %v1087_v2  ;;  %v349_v5 = vadd.s32 16, %v1087_v2  ;;  %v350_v6 = vadd.s32 24, %v1087_v2  ;;  %v365_v7 = vadd.s32 %v1091_v4, %v1087_v2 }
  0x55   : > { %v351_v9 = vadd.s32 32, %v1087_v2  ;;  %v352_v13 = vadd.s32 40, %v1087_v2  ;;  %v353_v16 = vadd.s32 48, %v1087_v2  ;;  %v354_v21 = vadd.s32 56, %v1087_v2 }
  0x56   : > { %v366_v8 = vadd.s32 %v1091_v4, %v348_v3  ;;  %v367_v10 = vadd.s32 %v1091_v4, %v349_v5  ;;  %v368_v14 = vadd.s32 %v1091_v4, %v350_v6  ;;  %vm381_vm0 = vcmp.lt.s32.totalorder %v365_v7, 200  ;;  %v340_v5 = vld [vmem:[%s1080_s10 + $0x50] sm:$0xff] }
  0x57   : > { %v369_v17 = vadd.s32 %v1091_v4, %v351_v9  ;;  %v397_v18 = vsel %vm381_vm0, %v330_v11, 0.0  ;;  %v370_v22 = vadd.s32 %v1091_v4, %v352_v13  ;;  %v355_v23 = vadd.s32 64, %v1087_v2  ;;  %s493_s16 = sadd.f32 (!%p686_p7), 200.0, %s492_s8  ;;  %s507_s12 = smul.f32 (!%p686_p7), 200.0, %s492_s8 }
  0x58   : > { %vm382_vm1 = vcmp.lt.s32.totalorder %v366_v8, 200  ;;  %vm383_vm2 = vcmp.lt.s32.totalorder %v367_v10, 200  ;;  %vm384_vm3 = vcmp.lt.s32.totalorder %v368_v14, 200  ;;  %v371_v27 = vadd.s32 %v1091_v4, %v353_v16 }
  0x59   : > { %v398_v19 = vsel %vm382_vm1, %v331_v12, 0.0  ;;  %v399_v24 = vsel %vm383_vm2, %v332_v15, 0.0  ;;  %vm385_vm4 = vcmp.lt.s32.totalorder %v369_v17, 200  ;;  %v438_v28 = vmul.f32 %v397_v18, %v397_v18  ;;  %v341_v12 = vld [vmem:[%s1080_s10 + $0x58] sm:$0xff] }
  0x5a   : > { %v414_v25 = vadd.f32 %v398_v19, %v397_v18  ;;  %v439_v29 = vmul.f32 %v398_v19, %v398_v19  ;;  %v400_v30 = vsel %vm384_vm3, %v333_v20, 0.0  ;;  %v356_v33 = vadd.s32 72, %v1087_v2  ;;  %v342_v18 = vld [vmem:[%s1080_s10 + $0x60] sm:$0xff] }
  0x5b   : > { %v372_v34 = vadd.s32 %v1091_v4, %v354_v21  ;;  %vm386_vm5 = vcmp.lt.s32.totalorder %v370_v22, 200  ;;  %v440_v35 = vmul.f32 %v399_v24, %v399_v24  ;;  %v357_v36 = vadd.s32 80, %v1087_v2 }
  0x5c   : > { %v415_v31 = vadd.f32 %v414_v25, %v399_v24  ;;  %v401_v37 = vsel %vm385_vm4, %v334_v26, 0.0  ;;  %v373_v40 = vadd.s32 %v1091_v4, %v355_v23  ;;  %vm387_vm6 = vcmp.lt.s32.totalorder %v371_v27, 200  ;;  %v343_v23 = vld [vmem:[%s1080_s10 + $0x68] sm:$0xff] }
  0x5d   : > { %v441_v41 = vmul.f32 %v400_v30, %v400_v30  ;;  %v454_v42 = vadd.f32 %v439_v29, %v438_v28  ;;  %v358_v43 = vadd.s32 88, %v1087_v2  ;;  %v402_v44 = vsel %vm386_vm5, %v335_v32, 0.0  ;;  %v344_v29 = vld [vmem:[%s1080_s10 + $0x70] sm:$0xff] }
  0x5e   : > { %v416_v38 = vadd.f32 %v415_v31, %v400_v30  ;;  %v374_v47 = vadd.s32 %v1091_v4, %v356_v33  ;;  %vm388_vm7 = vcmp.lt.s32.totalorder %v372_v34, 200  ;;  %v442_v48 = vmul.f32 %v401_v37, %v401_v37  ;;  %v345_v34 = vld [vmem:[%s1080_s10 + $0x78] sm:$0xff] }
  0x5f   : > { %v455_v49 = vadd.f32 %v454_v42, %v440_v35  ;;  %v359_v50 = vadd.s32 96, %v1087_v2  ;;  %v403_v51 = vsel %vm387_vm6, %v336_v39, 0.0  ;;  %v375_v54 = vadd.s32 %v1091_v4, %v357_v36 }
  0x60   : > { %v417_v45 = vadd.f32 %v416_v38, %v401_v37  ;;  %vm389_vm8 = vcmp.lt.s32.totalorder %v373_v40, 200  ;;  %v443_v55 = vmul.f32 %v402_v44, %v402_v44  ;;  %v360_v57 = vadd.s32 104, %v1087_v2 }
  0x61   : > { %v456_v56 = vadd.f32 %v455_v49, %v441_v41  ;;  %v404_v58 = vsel %vm388_vm7, %v337_v46, 0.0  ;;  %v376_v61 = vadd.s32 %v1091_v4, %v358_v43  ;;  %vm390_vm9 = vcmp.lt.s32.totalorder %v374_v47, 200 }
  0x62   : > { %v418_v52 = vadd.f32 %v417_v45, %v402_v44  ;;  %v444_v62 = vmul.f32 %v403_v51, %v403_v51  ;;  %v361_v0 = vadd.s32 112, %v1087_v2  ;;  %v405_v1 = vsel %vm389_vm8, %v338_v53, 0.0 }
  0x63   : > { %v457_v63 = vadd.f32 %v456_v56, %v442_v48  ;;  %v377_v6 = vadd.s32 %v1091_v4, %v359_v50  ;;  %vm391_vm10 = vcmp.lt.s32.totalorder %v375_v54, 200  ;;  %v445_v7 = vmul.f32 %v404_v58, %v404_v58  ;;  %v413_v56 = vld [vmem:[#allocation2] sm:$0x1] }
  0x64   : > { %v419_v59 = vadd.f32 %v418_v52, %v403_v51  ;;  %v362_v9 = vadd.s32 120, %v1087_v2  ;;  %v406_v10 = vsel %vm390_vm9, %v339_v60, 0.0  ;;  %v378_v13 = vadd.s32 %v1091_v4, %v360_v57 }
  0x65   : > { %v458_v8 = vadd.f32 %v457_v63, %v443_v55  ;;  %vm392_vm11 = vcmp.lt.s32.totalorder %v376_v61, 200  ;;  %v446_v14 = vmul.f32 %v405_v1, %v405_v1  ;;  %v407_v16 = vsel %vm391_vm10, %v340_v5, 0.0 }
  0x66   : > { %v420_v3 = vadd.f32 %v419_v59, %v404_v58  ;;  %v379_v19 = vadd.s32 %v1091_v4, %v361_v0  ;;  %vm393_vm12 = vcmp.lt.s32.totalorder %v377_v6, 200  ;;  %v447_v20 = vmul.f32 %v406_v10, %v406_v10 }
  0x67   : > { %v459_v15 = vadd.f32 %v458_v8, %v444_v62  ;;  %v408_v2 = vsel %vm392_vm11, %v341_v12, 0.0  ;;  %v380_v24 = vadd.s32 %v1091_v4, %v362_v9  ;;  %vm394_vm13 = vcmp.lt.s32.totalorder %v378_v13, 200  ;;  %v437_v62 = vld [vmem:[#allocation3] sm:$0x1]  ;;  %v491_v13 = vld [vmem:[%s1235_s2] sm:$0x1] (!%p686_p7) }
  0x68   : > { %v421_v11 = vadd.f32 %v420_v3, %v405_v1  ;;  %v448_v25 = vmul.f32 %v407_v16, %v407_v16  ;;  %v409_v27 = vsel %vm393_vm12, %v342_v18, 0.0  ;;  %vm395_vm14 = vcmp.lt.s32.totalorder %v379_v19, 200 }
  0x69   : > { %v460_v21 = vadd.f32 %v459_v15, %v445_v7  ;;  %v449_v30 = vmul.f32 %v408_v2, %v408_v2  ;;  %v410_v32 = vsel %vm394_vm13, %v343_v23, 0.0  ;;  %vm396_vm15 = vcmp.lt.s32.totalorder %v380_v24, 200 }
  0x6a   : > { %v422_v17 = vadd.f32 %v421_v11, %v406_v10  ;;  %v450_v35 = vmul.f32 %v409_v27, %v409_v27  ;;  %v411_v37 = vsel %vm395_vm14, %v344_v29, 0.0  ;;  %v451_v39 = vmul.f32 %v410_v32, %v410_v32  ;;  %v490_v11 = vld [vmem:[%s1234_s1] sm:$0x1] (!%p686_p7) }
  0x6b   : > { %v461_v26 = vadd.f32 %v460_v21, %v446_v14  ;;  %v412_v4 = vsel %vm396_vm15, %v345_v34, 0.0  ;;  %v452_v42 = vmul.f32 %v411_v37, %v411_v37  ;;  %v495_v1 = vstv (!%p686_p7), %s493_s16 }
  0x6c   : > { %v423_v22 = vadd.f32 %v422_v17, %v407_v16  ;;  %v453_v45 = vmul.f32 %v412_v4, %v412_v4  ;;  %771 = vrcp.f32 (!%p686_p7), %v495_v1  ;;  %v502_v14 = vstv (!%p686_p7), %s492_s8 }
  0x6d   : > { %v462_v31 = vadd.f32 %v461_v26, %v447_v20  ;;  %v503_v16 = vmul.f32 (!%p686_p7), %v502_v14, %v491_v13 }
  0x6e   : > { %v424_v28 = vadd.f32 %v423_v22, %v408_v2 }
  0x6f   : > { %v463_v36 = vadd.f32 %v462_v31, %v448_v25 }
  0x70   : > { %v425_v33 = vadd.f32 %v424_v28, %v409_v27 }
  0x71   : > { %v464_v40 = vadd.f32 %v463_v36, %v449_v30 }
  0x72   : > { %v426_v38 = vadd.f32 %v425_v33, %v410_v32 }
  0x73   : > { %v465_v43 = vadd.f32 %v464_v40, %v450_v35 }
  0x74   : > { %v427_v41 = vadd.f32 %v426_v38, %v411_v37 }
  0x75   : > { %v466_v46 = vadd.f32 %v465_v43, %v451_v39 }
  0x76   : > { %v428_v44 = vadd.f32 %v427_v41, %v412_v4  ;;  %v772_v3 = vpop.eup (!%p686_p7), %771 }
  0x77   : > { %v467_v48 = vadd.f32 %v466_v46, %v452_v42  ;;  %696 = vpush (!%p686_p7), %v772_v3 }
  0x78   : > { %v429_v47 = vrot.slane %v428_v44, 4 }
  0x79   : > { %v468_v50 = vadd.f32 %v467_v48, %v453_v45 }
  0x7a   : > { %v430_v49 = vadd.f32 %v429_v47, %v428_v44 }
  0x7b   : > { %v469_v52 = vrot.slane %v468_v50, 4 }
  0x7c   : > { %v431_v51 = vrot.slane %v430_v49, 2 }
  0x7d   : > { %v470_v54 = vadd.f32 %v469_v52, %v468_v50 }
  0x7e   : > { %v432_v53 = vadd.f32 %v431_v51, %v430_v49 }
  0x7f   : > { %v471_v57 = vrot.slane %v470_v54, 2 }
  0x80   : > { %v433_v55 = vrot.slane %v432_v53, 1 }
  0x81   : > { %v472_v59 = vadd.f32 %v471_v57, %v470_v54 }
  0x82   : > { %v434_v58 = vadd.f32 %v433_v55, %v432_v53 }
  0x83   : > { %v473_v61 = vrot.slane %v472_v59, 1  ;;  %480 = sbr.rel (%p686_p7) target bundleno = 193 (0xc1), region = 48 }
  0x84   : > { %v435_v60 = vadd.f32 %v434_v58, %v413_v56 }
  0x85   : > { %v474_v63 = vadd.f32 %v473_v61, %v472_v59 }
  0x86   : > { %436 = vst [vmem:[#allocation2] sm:$0x1] %v435_v60 }
  0x87   : > { %v475_v0 = vadd.f32 %v474_v63, %v437_v62 }
  0x89   : > { %476 = vst [vmem:[#allocation3] sm:$0x1] %v475_v0 }
  0x8d   : > { %v481_v5 = vld [vmem:[#allocation2] sm:$0x1] }
  0x8e   : > { %v483_v6 = vmul.f32 0.005, %v481_v5 }
  0x90   : > { %v485_v7 = vmul.f32 200.0, %v483_v6  ;;  %v484_v9 = vld [vmem:[#allocation3] sm:$0x1]  ;;  %v494_v15 = vsub.f32 %v483_v6, %v490_v11 }
  0x92   : > { %v486_v8 = vmul.f32 %v485_v7, %v483_v6  ;;  %v506_v18 = vmul.f32 %v494_v15, %v494_v15 }
  0x94   : > { %v487_v10 = vsub.f32 %v484_v9, %v486_v8 }
  0x96   : > { %v489_v12 = vmul.f32 0.0050251256, %v487_v10 }
  0x98   : > { %v504_v17 = vmul.f32 200.0, %v489_v12 }
  0x9a   : > { %v505_v20 = vadd.f32 %v504_v17, %v503_v16 }
  0xa8   : > { %s697_s13 = spop %696 }
  0xa9   : > { %s498_s15 = smul.f32 200.0, %s697_s13 }
  0xaa   : > { %s511_s17 = smul.f32 %s697_s13, %s507_s12 }
  0xab   : > { %v499_v19 = vstv %s498_s15 }
  0xac   : > { %v500_v21 = vmul.f32 %v499_v19, %v494_v15  ;;  %v512_v2 = vstv %s511_s17 }
  0xad   : > { %v513_v22 = vmul.f32 %v512_v2, %v506_v18 }
  0xae   : > { %v501_v23 = vadd.f32 %v500_v21, %v490_v11 }
  0xaf   : > { %v514_v24 = vadd.f32 %v513_v22, %v505_v20 }
  0xb0   : > { %518 = vst [vmem:[#allocation8] sm:$0x1] %v501_v23 }
  0xb1   : > { %v517_v25 = vmul.f32 %v772_v3, %v514_v24 }
  0xb3   : > { %519 = vst [vmem:[#allocation9] sm:$0x1] %v517_v25  ;;  %v520_v26 = vadd.f32 1e-08, %v517_v25 }
  0xb5   : > { %773 = vrsqrt.f32 %v520_v26 }
  0xbf   : > { %v774_v27 = vpop.eup %773 }
  0xc0   : > { %522 = vst [vmem:[#allocation11] sm:$0x1] %v774_v27 }
  0xc1 PF: > { %p1149_p4 = scmp.eq.s32.totalorder %s670_s3, 1  ;;  %s945_s19 = smov [#allocation9]  }
  0xc2   : > { %s545_s20 = sshll.u32 %s945_s19, 4  ;;  %s546_s20 = int_to_ptr.vmem [resolvable:$true] %s545_s20 }
  0xc3   : > { %s803_s23 = scalar_lea.vmem %s546_s20, 16  ;;  %s809_s30 = scalar_lea.vmem %s546_s20, 32 }
  0xc4   : > { %p804_p5 = scmp.ne.s32.totalorder %s546_s20, %s803_s23  ;;  %p810_p9 = scmp.lt.s32.totalorder %s546_s20, %s546_s20 }
  0xc5   : > { %p811_p11 = scmp.lt.s32.totalorder %s809_s30, %s803_s23 }
  0xc6   : > { %p805_p6 = pnand %p804_p5, %p1149_p4 }
  0xc7   : > { %p812_p12 = por %p811_p11, %p810_p9 }
  0xc8   : > { %p806_p8 = pneg %p805_p6 }
  0xca   : > { %p813_p0 = pnand %p812_p12, %p806_p8 }
  0xcc   : > { %816 = shalt.err (!%p813_p0)
}
  0xcd   : > { %s817_s10 = scalar_lea.hbm %s1238_s5, 16 }
  0xce   : > { %p818_p1 = scmp.ne.s32.totalorder %s1238_s5, %s817_s10  ;;  %p823_p3 = scmp.lt.u32.totalorder %s817_s10, %s1238_s5 }
  0xd0   : > { %p819_p13 = pnand %p818_p1, %p1149_p4 }
  0xd2   : > { %p820_p2 = pneg %p819_p13 }
  0xd4   : > { %p825_p10 = pnand %p823_p3, %p820_p2 }
  0xd6   : > { %828 = shalt.err (!%p825_p10)
}
  0xd7   : > { %702 = dma.vmem_to_hbm [thread:$0]  (%p1149_p4), %s546_s20, 16, %s1238_s5, [#allocation10]  }
  0xd8   : > { %s946_s26 = smov [#allocation8]   ;;  %s947_s13 = smov [#allocation11]  }
  0xd9   : > { %s532_s12 = sshll.u32 %s946_s26, 4  ;;  %s558_s15 = sshll.u32 %s947_s13, 4  ;;  %s533_s12 = int_to_ptr.vmem [resolvable:$true] %s532_s12  ;;  %s559_s15 = int_to_ptr.vmem [resolvable:$true] %s558_s15 }
  0xda   : > { %s829_s17 = scalar_lea.vmem %s533_s12, 16  ;;  %s835_s19 = scalar_lea.vmem %s533_s12, 32 }
  0xdb   : > { %p830_p7 = scmp.ne.s32.totalorder %s533_s12, %s829_s17  ;;  %p836_p8 = scmp.lt.s32.totalorder %s533_s12, %s533_s12 }
  0xdc   : > { %p837_p9 = scmp.lt.s32.totalorder %s835_s19, %s829_s17 }
  0xdd   : > { %p831_p5 = pnand %p830_p7, %p1149_p4 }
  0xde   : > { %p838_p11 = por %p837_p9, %p836_p8 }
  0xdf   : > { %p832_p6 = pneg %p831_p5 }
  0xe1   : > { %p839_p12 = pnand %p838_p11, %p832_p6 }
  0xe3   : > { %842 = shalt.err (!%p839_p12)
}
  0xe4   : > { %s843_s20 = scalar_lea.hbm %s1237_s4, 16 }
  0xe5   : > { %p844_p0 = scmp.ne.s32.totalorder %s1237_s4, %s843_s20  ;;  %p849_p2 = scmp.lt.u32.totalorder %s843_s20, %s1237_s4 }
  0xe7   : > { %p845_p1 = pnand %p844_p0, %p1149_p4 }
  0xe9   : > { %p846_p13 = pneg %p845_p1 }
  0xeb   : > { %p851_p3 = pnand %p849_p2, %p846_p13 }
  0xed   : > { %854 = shalt.err (!%p851_p3)
}
  0xee   : > { %700 = dma.vmem_to_hbm [thread:$0]  (%p1149_p4), %s533_s12, 16, %s1237_s4, [#allocation7]  }
  0xef   : > { %s855_s21 = scalar_lea.vmem %s559_s15, 16  ;;  %s861_s22 = scalar_lea.vmem %s559_s15, 32 }
  0xf0   : > { %p856_p10 = scmp.ne.s32.totalorder %s559_s15, %s855_s21  ;;  %p862_p6 = scmp.lt.s32.totalorder %s559_s15, %s559_s15 }
  0xf1   : > { %p863_p8 = scmp.lt.s32.totalorder %s861_s22, %s855_s21 }
  0xf2   : > { %p857_p7 = pnand %p856_p10, %p1149_p4 }
  0xf3   : > { %p864_p9 = por %p863_p8, %p862_p6 }
  0xf4   : > { %p858_p5 = pneg %p857_p7 }
  0xf6   : > { %p865_p11 = pnand %p864_p9, %p858_p5 }
  0xf8   : > { %868 = shalt.err (!%p865_p11)
}
  0xf9   : > { %s869_s13 = scalar_lea.hbm %s1239_s6, 16 }
  0xfa   : > { %p870_p12 = scmp.ne.s32.totalorder %s1239_s6, %s869_s13  ;;  %p875_p13 = scmp.lt.u32.totalorder %s869_s13, %s1239_s6 }
  0xfc   : > { %p871_p0 = pnand %p870_p12, %p1149_p4 }
  0xfe   : > { %p872_p1 = pneg %p871_p0 }
 0x100   : > { %p877_p2 = pnand %p875_p13, %p872_p1 }
 0x102   : > { %880 = shalt.err (!%p877_p2)
}
 0x103   : > { %704 = dma.vmem_to_hbm [thread:$0]  (%p1149_p4), %s559_s15, 16, %s1239_s6, [#allocation10]  }
 0x104   : > { %910 = dma.done.wait (%p1149_p4), [#allocation7], 16  }
 0x105   : > { %912 = vsyncadd (%p1149_p4), [#allocation7], 4294967280 }
 0x106   : > { %914 = dma.done.wait (%p1149_p4), [#allocation10], 32  }
 0x107   : > { %916 = vsyncadd (%p1149_p4), [#allocation10], 4294967264 }
 0x108 PF: > { %s23_s28 = sadd.s32 1, %s939_s28   ;;  %s1242_s23 = smov %s923_s24 }
 0x109   : > { %p20_p3 = scmp.ge.s32.totalorder %s23_s28, 4   ;;  %s1243_s24 = smov %s927_s25 }
 0x10a   : > { %s1244_s25 = smov %s1032_s9  ;;  %s1245_s26 = smov %s935_s27 }
 0x10b   : > { %s1246_s27 = smov %s1248_s29  ;;  %22 = sbr.rel (!%p20_p3) target bundleno = 8 (0x8), region = 106 }
 0x112   :  { %579 = vsyncpa [#allocation6], 1 }
 0x113   :  { %581 = vsyncpa [#allocation6 + $0x1], 1 }
 0x114   :  { %582 = vsyncpa [#allocation7], 1 }
 0x115   :  { %584 = vsyncpa [#allocation7 + $0x1], 1 }
 0x116   :  { %585 = vsyncpa [#allocation10], 1 }

</bundles_post_ra>
